<compile_context>
chip_gen: v5e
topology: v5e:2x2
jax: 0.10.0
libtpu: 0.0.40
codegen_flags: <defaults>
</compile_context>

<pallas_src>
import functools

import jax
import jax.numpy as jnp
from jax.experimental import pallas as pl
from jax.experimental.pallas import tpu as pltpu


def _round_up(x: int, m: int) -> int:
    return (x + m - 1) // m * m


# --------------------------------------------------------------------------
# Kernel: grid = (batch_blocks, K_blocks) over the folded T*H contraction.
# --------------------------------------------------------------------------
def _ensemble_kernel(x_ref, w1_ref, b1_ref, w2_ref, b2_ref, o_ref, acc_ref):
    k = pl.program_id(1)

    @pl.when(k == 0)
    def _init():
        acc_ref[...] = jnp.zeros_like(acc_ref)

    # Hidden slab for this K tile: bf16 MXU matmul, fp32 accumulate.
    h = jnp.dot(x_ref[...], w1_ref[...], preferred_element_type=jnp.float32)
    h = h + b1_ref[...]                       # fp32 bias add
    h = jax.nn.gelu(h, approximate=True)      # tanh GELU -> EUP-friendly

    # Second matmul of this K tile, accumulated in fp32 scratch.
    acc_ref[...] += jnp.dot(h.astype(w2_ref.dtype), w2_ref[...],
                            preferred_element_type=jnp.float32)

    @pl.when(k == pl.num_programs(1) - 1)
    def _finalize():
        o_ref[...] = (acc_ref[...] + b2_ref[...]).astype(o_ref.dtype)


# --------------------------------------------------------------------------
# One-time parameter folding (hoisted out of the per-call forward path).
# --------------------------------------------------------------------------
def prepare_aicube_ensemble_params(w1, b1, w2, b2, compute_dtype=jnp.bfloat16,
                                   max_tk=2048):
    """w1: [T, D_IN, H]; b1: [T, 1, H]; w2: [T, H, D_OUT]; b2: [T, 1, D_OUT]."""
    T, d_in, hidden = w1.shape
    d_out = w2.shape[-1]
    th = T * hidden

    # ---- Algebraic ensemble folding (translator-major hidden index t*H+h) --
    w1_cat = jnp.transpose(w1, (1, 0, 2)).reshape(d_in, th)            # [D_IN, T*H]
    b1_cat = b1.reshape(1, th).astype(jnp.float32)                     # [1, T*H]
    w2_cat = w2.reshape(th, d_out) * (1.0 / T)                         # [T*H, D_OUT]
    b2_mean = jnp.mean(b2.astype(jnp.float32), axis=0).reshape(1, d_out)

    # ---- Lane-dense padding + K-tile size ----------------------------------
    d_in_p = _round_up(d_in, 128)
    d_out_p = _round_up(d_out, 128)
    th_128 = _round_up(th, 128)
    tk = min(th_128, max_tk)          # K slab; bf16 double-buffered ~= few MiB
    th_p = _round_up(th_128, tk)      # pad so the K grid divides exactly

    w1_p = jnp.pad(w1_cat, ((0, d_in_p - d_in), (0, th_p - th))).astype(compute_dtype)
    b1_p = jnp.pad(b1_cat, ((0, 0), (0, th_p - th)))                   # fp32
    w2_p = jnp.pad(w2_cat, ((0, th_p - th), (0, d_out_p - d_out))).astype(compute_dtype)
    b2_p = jnp.pad(b2_mean, ((0, 0), (0, d_out_p - d_out)))            # fp32

    return dict(w1=w1_p, b1=b1_p, w2=w2_p, b2=b2_p,
                d_in=d_in, d_out=d_out, tk=tk, compute_dtype=compute_dtype)


# --------------------------------------------------------------------------
# Generation-aware batch tile + shape-derived VMEM limit.
# --------------------------------------------------------------------------
@functools.lru_cache(maxsize=None)
def _device_target_rows():
    # v6e/v7x MXU is 2x256x256 -> 256-row LHS tiles; v5e/v5p are 128-wide.
    try:
        kind = jax.devices()[0].device_kind.lower()
        if "v5" in kind:
            return 128, True
    except Exception:
        pass
    return 256, False


def _pick_batch_tile(B: int):
    target, is_v5 = _device_target_rows()
    if B >= target:
        block_b = target
    else:
        block_b = _round_up(max(B, 1), 16)     # bf16 sublane minimum is 16 rows
    b_p = _round_up(B, block_b)
    # v7x megacore: ensure >= 2 parallel batch blocks when the batch is big
    # enough to split, so both TensorCores get work (no-op penalty elsewhere).
    if (not is_v5) and b_p // block_b < 2 and block_b % 32 == 0 and B > 16:
        block_b //= 2
        b_p = _round_up(B, block_b)
    return block_b, b_p


def _vmem_limit_bytes(block_b, d_in_p, tk, d_out_p, w_itemsize, out_itemsize):
    req = (
        2 * block_b * d_in_p * w_itemsize        # x tile (double-buffered)
        + 2 * d_in_p * tk * w_itemsize           # W1 K-slab (double-buffered)
        + 2 * 8 * tk * 4                         # b1 K-slab (fp32, sublane-padded)
        + 2 * tk * d_out_p * w_itemsize          # W2 K-slab (double-buffered)
        + 2 * 8 * d_out_p * 4                    # mean(b2)
        + 2 * block_b * d_out_p * out_itemsize   # output tile
        + block_b * d_out_p * 4                  # fp32 accumulator scratch
    )
    req = int(req * 1.5)                         # headroom for compiler temporaries
    # 48 MiB is safe on every generation (v7x has 64 MiB physical VMEM);
    # v5e/v6e (128 MiB) never reject the small K-tiled slabs used here.
    return max(32 * 1024 * 1024, min(req, 48 * 1024 * 1024))


# --------------------------------------------------------------------------
# Forward: per-call path only pads/casts x and launches the kernel.
# --------------------------------------------------------------------------
def aicube_ensemble_forward(x, params):
    w1_p, b1_p = params["w1"], params["b1"]
    w2_p, b2_p = params["w2"], params["b2"]
    d_in, d_out, tk = params["d_in"], params["d_out"], params["tk"]
    cdt = params["compute_dtype"]

    d_in_p, th_p = w1_p.shape
    d_out_p = w2_p.shape[-1]
    B = x.shape[0]
    out_dtype = x.dtype

    block_b, b_p = _pick_batch_tile(B)
    x_p = jnp.pad(x, ((0, b_p - B), (0, d_in_p - d_in))).astype(cdt)

    grid = (b_p // block_b, th_p // tk)          # (batch parallel, K reduction)
    vmem_limit = _vmem_limit_bytes(
        block_b, d_in_p, tk, d_out_p,
        jnp.dtype(cdt).itemsize, jnp.dtype(out_dtype).itemsize)

    out_p = pl.pallas_call(
        _ensemble_kernel,
        out_shape=jax.ShapeDtypeStruct((b_p, d_out_p), out_dtype),
        grid=grid,
        in_specs=[
            pl.BlockSpec((block_b, d_in_p), lambda i, k: (i, 0)),   # x tile
            pl.BlockSpec((d_in_p, tk), lambda i, k: (0, k)),        # W1 K-slab
            pl.BlockSpec((1, tk), lambda i, k: (0, k)),             # b1 K-slab
            pl.BlockSpec((tk, d_out_p), lambda i, k: (k, 0)),       # W2/T K-slab
            pl.BlockSpec((1, d_out_p), lambda i, k: (0, 0)),        # mean(b2)
        ],
        out_specs=pl.BlockSpec((block_b, d_out_p), lambda i, k: (i, 0)),
        scratch_shapes=[pltpu.VMEM((block_b, d_out_p), jnp.float32)],
        compiler_params=pltpu.CompilerParams(
            dimension_semantics=("parallel", "arbitrary"),
            vmem_limit_bytes=vmem_limit,
        ),
    )(x_p, w1_p, b1_p, w2_p, b2_p)

    return out_p[:B, :d_out]


# --------------------------------------------------------------------------
# Pure-JAX reference (per-translator loop, fp32) and self-test.
# --------------------------------------------------------------------------
def _reference(x, w1, b1, w2, b2):
    outs = []
    for t in range(w1.shape[0]):
        h = x @ w1[t] + b1[t]
        h = jax.nn.gelu(h, approximate=True)
        outs.append(h @ w2[t] + b2[t])
    return jnp.mean(jnp.stack(outs, axis=0), axis=0)


if __name__ == "__main__":
    # Small shapes: ensemble of 3 translators, batch=8 embeddings of dim 32.
    T = 3        # number of translators in the ensemble
    B = 8        # batch of embeddings
    D_IN = 32    # source embedding dim
    HIDDEN = 64  # translator hidden dim
    D_OUT = 32   # target embedding dim

    key = jax.random.PRNGKey(0)
    kx, k1, k2, k3, k4 = jax.random.split(key, 5)

    x = jax.random.normal(kx, (B, D_IN), dtype=jnp.float32)

    # Deterministic synthetic parameters for the T translators.
    w1 = jax.random.normal(k1, (T, D_IN, HIDDEN), dtype=jnp.float32) * 0.05
    b1 = jax.random.normal(k2, (T, 1, HIDDEN), dtype=jnp.float32) * 0.01
    w2 = jax.random.normal(k3, (T, HIDDEN, D_OUT), dtype=jnp.float32) * 0.05
    b2 = jax.random.normal(k4, (T, 1, D_OUT), dtype=jnp.float32) * 0.01

    # One-time weight folding/padding/bf16 cast (static translator weights).
    params = prepare_aicube_ensemble_params(w1, b1, w2, b2)
    params = jax.tree_util.tree_map(
        lambda a: jax.block_until_ready(a) if isinstance(a, jax.Array) else a,
        params)

    out = aicube_ensemble_forward(x, params)
    out = jax.block_until_ready(out)

    ref = _reference(x, w1, b1, w2, b2)
    assert out.shape == (B, D_OUT)
    # bf16 weights/activations on the MXU (fp32 accumulation) + reordered
    # summation of the folded contraction -> ~1e-3-level drift vs fp32 ref.
    assert jnp.allclose(out.astype(jnp.float32), ref, atol=1e-2, rtol=1e-2)

    print("KERNEL_OK")
</pallas_src>

<mosaic_0001>
module attributes {stable_mosaic.version = 11 : i64} {
  func.func @_ensemble_kernel(%arg0: i32, %arg1: i32, %arg2: memref<16x128xbf16, #tpu.memory_space<vmem>>, %arg3: memref<128x256xbf16, #tpu.memory_space<vmem>>, %arg4: memref<1x256xf32, #tpu.memory_space<vmem>>, %arg5: memref<256x128xbf16, #tpu.memory_space<vmem>>, %arg6: memref<1x128xf32, #tpu.memory_space<vmem>>, %arg7: memref<16x128xf32, #tpu.memory_space<vmem>>, %arg8: memref<16x128xf32, #tpu.memory_space<vmem>>) attributes {dimension_semantics = [#tpu.dimension_semantics<parallel>, #tpu.dimension_semantics<arbitrary>], iteration_bounds = array<i64: 1, 1>, scalar_prefetch = 0 : i64, scratch_operands = 1 : i64, tpu.core_type = #tpu.core_type<tc>, window_params = [{transform_indices = @transform_0, window_bounds = array<i64: 16, 128>}, {transform_indices = @transform_1, window_bounds = array<i64: 128, 256>}, {transform_indices = @transform_2, window_bounds = array<i64: 1, 256>}, {transform_indices = @transform_3, window_bounds = array<i64: 256, 128>}, {pipeline_mode = #tpu.pipeline_mode<synchronous>, transform_indices = @transform_4, window_bounds = array<i64: 1, 128>}, {transform_indices = @transform_5, window_bounds = array<i64: 16, 128>}]} {
    %c0_i32 = arith.constant 0 : i32
    %0 = arith.cmpi eq, %arg1, %c0_i32 : i32
    %1 = arith.extui %0 : i1 to i32
    %c0_i32_0 = arith.constant 0 : i32
    %2 = arith.cmpi ne, %1, %c0_i32_0 : i32
    scf.if %2 {
      %cst_19 = arith.constant 0.000000e+00 : f32
      %31 = vector.broadcast %cst_19 : f32 to vector<16x128xf32>
      %c0_20 = arith.constant 0 : index
      %c0_21 = arith.constant 0 : index
      %32 = vector.load %arg8[%c0_20, %c0_21] : memref<16x128xf32, #tpu.memory_space<vmem>>, vector<16x128xf32>
      tpu.vector_store %arg8[%c0_20, %c0_21], %31 {strides = array<i32>} : memref<16x128xf32, #tpu.memory_space<vmem>>, vector<16x128xf32>,
    } else {
    }
    %c0 = arith.constant 0 : index
    %c0_1 = arith.constant 0 : index
    %3 = vector.load %arg2[%c0, %c0_1] : memref<16x128xbf16, #tpu.memory_space<vmem>>, vector<16x128xbf16>
    %c0_2 = arith.constant 0 : index
    %c0_3 = arith.constant 0 : index
    %4 = vector.load %arg3[%c0_2, %c0_3] : memref<128x256xbf16, #tpu.memory_space<vmem>>, vector<128x256xbf16>
    %cst = arith.constant dense<0.000000e+00> : vector<16x256xf32>
    %5 = tpu.matmul %3, %4, %cst {dimension_numbers = #tpu.dot_dimension_numbers<[1], [0], [0], [1], [0, 0, 1, 1], [], []>} : vector<16x128xbf16>, vector<128x256xbf16>, vector<16x256xf32> -> vector<16x256xf32>
    %c0_4 = arith.constant 0 : index
    %c0_5 = arith.constant 0 : index
    %6 = vector.load %arg4[%c0_4, %c0_5] : memref<1x256xf32, #tpu.memory_space<vmem>>, vector<1x256xf32>
    %7 = vector.broadcast %6 : vector<1x256xf32> to vector<16x256xf32>
    %8 = arith.addf %5, %7 : vector<16x256xf32>
    %9 = arith.mulf %8, %8 : vector<16x256xf32>
    %10 = arith.mulf %8, %9 : vector<16x256xf32>
    %cst_6 = arith.constant 4.471500e-02 : f32
    %11 = vector.broadcast %cst_6 : f32 to vector<16x256xf32>
    %12 = arith.mulf %11, %10 : vector<16x256xf32>
    %13 = arith.addf %8, %12 : vector<16x256xf32>
    %cst_7 = arith.constant 0.797884583 : f32
    %14 = vector.broadcast %cst_7 : f32 to vector<16x256xf32>
    %15 = arith.mulf %14, %13 : vector<16x256xf32>
    %16 = math.tanh %15 : vector<16x256xf32>
    %cst_8 = arith.constant 1.000000e+00 : f32
    %17 = vector.broadcast %cst_8 : f32 to vector<16x256xf32>
    %18 = arith.addf %17, %16 : vector<16x256xf32>
    %cst_9 = arith.constant 5.000000e-01 : f32
    %19 = vector.broadcast %cst_9 : f32 to vector<16x256xf32>
    %20 = arith.mulf %19, %18 : vector<16x256xf32>
    %21 = arith.mulf %8, %20 : vector<16x256xf32>
    %c0_10 = arith.constant 0 : index
    %c0_11 = arith.constant 0 : index
    %22 = vector.load %arg8[%c0_10, %c0_11] : memref<16x128xf32, #tpu.memory_space<vmem>>, vector<16x128xf32>
    %23 = arith.truncf %21 : vector<16x256xf32> to vector<16x256xbf16>
    %c0_12 = arith.constant 0 : index
    %c0_13 = arith.constant 0 : index
    %24 = vector.load %arg5[%c0_12, %c0_13] : memref<256x128xbf16, #tpu.memory_space<vmem>>, vector<256x128xbf16>
    %cst_14 = arith.constant dense<0.000000e+00> : vector<16x128xf32>
    %25 = tpu.matmul %23, %24, %cst_14 {dimension_numbers = #tpu.dot_dimension_numbers<[1], [0], [0], [1], [0, 0, 1, 1], [], []>} : vector<16x256xbf16>, vector<256x128xbf16>, vector<16x128xf32> -> vector<16x128xf32>
    %26 = arith.addf %22, %25 : vector<16x128xf32>
    %c0_15 = arith.constant 0 : index
    %c0_16 = arith.constant 0 : index
    %27 = vector.load %arg8[%c0_15, %c0_16] : memref<16x128xf32, #tpu.memory_space<vmem>>, vector<16x128xf32>
    tpu.vector_store %arg8[%c0_15, %c0_16], %26 {strides = array<i32>} : memref<16x128xf32, #tpu.memory_space<vmem>>, vector<16x128xf32>,
    %c0_i32_17 = arith.constant 0 : i32
    %28 = arith.cmpi eq, %arg1, %c0_i32_17 : i32
    %29 = arith.extui %28 : i1 to i32
    %c0_i32_18 = arith.constant 0 : i32
    %30 = arith.cmpi ne, %29, %c0_i32_18 : i32
    scf.if %30 {
      %c0_19 = arith.constant 0 : index
      %c0_20 = arith.constant 0 : index
      %31 = vector.load %arg8[%c0_19, %c0_20] : memref<16x128xf32, #tpu.memory_space<vmem>>, vector<16x128xf32>
      %c0_21 = arith.constant 0 : index
      %c0_22 = arith.constant 0 : index
      %32 = vector.load %arg6[%c0_21, %c0_22] : memref<1x128xf32, #tpu.memory_space<vmem>>, vector<1x128xf32>
      %33 = vector.broadcast %32 : vector<1x128xf32> to vector<16x128xf32>
      %34 = arith.addf %31, %33 : vector<16x128xf32>
      %c0_23 = arith.constant 0 : index
      %c0_24 = arith.constant 0 : index
      %35 = vector.load %arg7[%c0_23, %c0_24] : memref<16x128xf32, #tpu.memory_space<vmem>>, vector<16x128xf32>
      tpu.vector_store %arg7[%c0_23, %c0_24], %34 {strides = array<i32>} : memref<16x128xf32, #tpu.memory_space<vmem>>, vector<16x128xf32>,
    } else {
    }
    return
  }
  func.func @transform_0(%arg0: i32, %arg1: i32) -> (i32, i32) {
    %c0_i32 = arith.constant 0 : i32
    %c0_i32_0 = arith.constant 0 : i32
    return %arg0, %c0_i32 : i32, i32
  }
  func.func @transform_1(%arg0: i32, %arg1: i32) -> (i32, i32) {
    %c0_i32 = arith.constant 0 : i32
    %c0_i32_0 = arith.constant 0 : i32
    return %c0_i32, %arg1 : i32, i32
  }
  func.func @transform_2(%arg0: i32, %arg1: i32) -> (i32, i32) {
    %c0_i32 = arith.constant 0 : i32
    %c0_i32_0 = arith.constant 0 : i32
    return %c0_i32, %arg1 : i32, i32
  }
  func.func @transform_3(%arg0: i32, %arg1: i32) -> (i32, i32) {
    %c0_i32 = arith.constant 0 : i32
    %c0_i32_0 = arith.constant 0 : i32
    return %arg1, %c0_i32 : i32, i32
  }
  func.func @transform_4(%arg0: i32, %arg1: i32) -> (i32, i32) {
    %c0_i32 = arith.constant 0 : i32
    %c0_i32_0 = arith.constant 0 : i32
    %c0_i32_1 = arith.constant 0 : i32
    return %c0_i32, %c0_i32_0 : i32, i32
  }
  func.func @transform_5(%arg0: i32, %arg1: i32) -> (i32, i32) {
    %c0_i32 = arith.constant 0 : i32
    %c0_i32_0 = arith.constant 0 : i32
    return %arg0, %c0_i32 : i32, i32
  }
}

</mosaic_0001>

<bundles_post_ra>
// kernel: tpu_custom_call.1
= control target key start
LH: loop header
LB: loop body
LE: loop exit
PB: predicated region body
PF: predicated region fallthrough
CT: control target
= control target key end

     0   :  { %10 = vsyncpa [#allocation4], 0  ;;  %s834_s0 = inlined_call_operand.hbm [shape: bf16[16,128], index: 0, kind: input, shape index: {}]   ;;  %s835_s1 = inlined_call_operand.hbm [shape: bf16[128,256], index: 1, kind: input, shape index: {}]   ;;  %s836_s2 = inlined_call_operand.hbm [shape: f32[1,256], index: 2, kind: input, shape index: {}]   ;;  %s837_s3 = inlined_call_operand.hbm [shape: bf16[256,128], index: 3, kind: input, shape index: {}]   ;;  %s838_s4 = inlined_call_operand.vmem [shape: f32[1,128], index: 4, kind: input, shape index: {}]   ;;  %s839_s5 = inlined_call_operand.hbm [shape: f32[16,128], index: 5, kind: output, shape index: {}]  }
   0x1   :  { %11 = vsyncpa [#allocation7], 0 }
   0x2   :  { %12 = vsyncpa [#allocation10], 0  ;;  %s31_s20 = sshll.u32 %s835_s1, 4  ;;  %s32_s20 = int_to_ptr.hbm [resolvable:$true] %s31_s20 }
   0x3   :  { %13 = vsyncpa [#allocation5], 0  ;;  %s771_s21 = smov [#allocation6]   ;;  %s18_s25 = sshll.u32 %s834_s0, 4  ;;  %s19_s25 = int_to_ptr.hbm [resolvable:$true] %s18_s25 }
   0x4   :  { %s33_s22 = sshll.u32 %s771_s21, 4  ;;  %s772_s26 = smov 128   ;;  %s34_s22 = int_to_ptr.vmem [resolvable:$true] %s33_s22 }
   0x5   :  { %s773_s27 = smov 8   ;;  %s774_s28 = smov [#allocation3]  }
   0x6   :  { %39 = dma.hbm_to_vmem [thread:$0]  %s32_s20, 2048, %s34_s22, [#allocation7], %s772_s26, %s772_s26, %s773_s27  }
   0x7   :  { %s20_s29 = sshll.u32 %s774_s28, 4  ;;  %s775_s1 = smov 64   ;;  %s21_s29 = int_to_ptr.vmem [resolvable:$true] %s20_s29 }
   0x8   :  { %s776_s30 = smov 4   ;;  %s45_s8 = sshll.u32 %s836_s2, 4  ;;  %s46_s8 = int_to_ptr.hbm [resolvable:$true] %s45_s8 }
   0x9   :  { %26 = dma.hbm_to_vmem [thread:$0]  %s19_s25, 128, %s21_s29, [#allocation4], %s775_s1, %s775_s1, %s776_s30  }
   0xa   :  { %s777_s9 = smov [#allocation8]   ;;  %s55_s12 = sshll.u32 %s837_s3, 4  ;;  %s56_s12 = int_to_ptr.hbm [resolvable:$true] %s55_s12 }
   0xb   :  { %s47_s0 = sshll.u32 %s777_s9, 4  ;;  %s778_s13 = smov [#allocation9]   ;;  %s48_s0 = int_to_ptr.vmem [resolvable:$true] %s47_s0 }
   0xc   :  { %50 = dma.hbm_to_vmem [thread:$0]  %s46_s8, 32, %s48_s0, [#allocation7]  }
   0xd   :  { %s57_s14 = sshll.u32 %s778_s13, 4  ;;  %s58_s14 = int_to_ptr.vmem [resolvable:$true] %s57_s14 }
   0xe   :  { %63 = dma.hbm_to_vmem [thread:$0]  %s56_s12, 2048, %s58_s14, [#allocation10], %s775_s1, %s775_s1, %s776_s30  }
   0xf   :  { %763 = dma.done.wait [#allocation4], 128  }
  0x10   :  { %764 = vsyncadd [#allocation4], 4294967168 }
  0x11   :  { %765 = dma.done.wait [#allocation7], 2080  }
  0x12   :  { %766 = vsyncadd [#allocation7], 4294965216 }
  0x13   :  { %767 = dma.done.wait [#allocation10], 2048  }
  0x14   :  { %768 = vsyncadd [#allocation10], 4294965248  ;;  %v522_v0 = vld [vmem:[#allocation6 + $0x70] sm:$0xf]  ;;  %v608_v1 = vld [vmem:[#allocation6 + $0x74] sm:$0xf0] }
  0x15   :  { %v607_v2 = vld [vmem:[#allocation6 + $0x74] sm:$0xf]  ;;  %v523_v3 = vor.u32 %v608_v1, %v522_v0  ;;  %v524_v4 = vld [vmem:[#allocation6 + $0x78] sm:$0xf0]  ;;  %v514_v5 = vld [vmem:[#allocation6 + $0x60] sm:$0xf] }
  0x16   :  { %v606_v6 = vld [vmem:[#allocation6 + $0x64] sm:$0xf0]  ;;  %v527_v7 = vor.u32 %v607_v2, %v524_v4  ;;  %v605_v8 = vld [vmem:[#allocation6 + $0x64] sm:$0xf]  ;;  %v516_v9 = vld [vmem:[#allocation6 + $0x68] sm:$0xf0] }
  0x17   :  { %198 = vmatpush.bf16.msra.mxu0 %v523_v3  ;;  %v515_v10 = vor.u32 %v606_v6, %v514_v5  ;;  %v519_v11 = vor.u32 %v605_v8, %v516_v9  ;;  %v506_v12 = vld [vmem:[#allocation6 + $0x50] sm:$0xf]  ;;  %v604_v13 = vld [vmem:[#allocation6 + $0x54] sm:$0xf0]  ;;  %v603_v14 = vld [vmem:[#allocation6 + $0x54] sm:$0xf] }
  0x18   :  { %212 = vmatpush.bf16.msra.mxu1 %v527_v7  ;;  %v508_v15 = vld [vmem:[#allocation6 + $0x58] sm:$0xf0]  ;;  %v507_v16 = vor.u32 %v604_v13, %v506_v12  ;;  %v498_v18 = vld [vmem:[#allocation6 + $0x40] sm:$0xf]  ;;  %v602_v19 = vld [vmem:[#allocation6 + $0x44] sm:$0xf0] }
  0x19   :  { %v511_v17 = vor.u32 %v603_v14, %v508_v15  ;;  %v601_v20 = vld [vmem:[#allocation6 + $0x44] sm:$0xf]  ;;  %v500_v21 = vld [vmem:[#allocation6 + $0x48] sm:$0xf0]  ;;  %v499_v22 = vor.u32 %v602_v19, %v498_v18  ;;  %v490_v24 = vld [vmem:[#allocation6 + $0x30] sm:$0xf] }
  0x1a   :  { %v503_v23 = vor.u32 %v601_v20, %v500_v21  ;;  %v600_v25 = vld [vmem:[#allocation6 + $0x34] sm:$0xf0]  ;;  %v599_v26 = vld [vmem:[#allocation6 + $0x34] sm:$0xf]  ;;  %v492_v27 = vld [vmem:[#allocation6 + $0x38] sm:$0xf0] }
  0x1b   :  { %199 = vmatpush.bf16.msra.mxu0 %v515_v10  ;;  %v491_v28 = vor.u32 %v600_v25, %v490_v24  ;;  %v495_v29 = vor.u32 %v599_v26, %v492_v27  ;;  %v482_v30 = vld [vmem:[#allocation6 + $0x20] sm:$0xf]  ;;  %v598_v31 = vld [vmem:[#allocation6 + $0x24] sm:$0xf0]  ;;  %v597_v32 = vld [vmem:[#allocation6 + $0x24] sm:$0xf] }
  0x1c   :  { %213 = vmatpush.bf16.msra.mxu1 %v519_v11  ;;  %v484_v33 = vld [vmem:[#allocation6 + $0x28] sm:$0xf0]  ;;  %v483_v34 = vor.u32 %v598_v31, %v482_v30  ;;  %v474_v36 = vld [vmem:[#allocation6 + $0x10] sm:$0xf]  ;;  %v596_v37 = vld [vmem:[#allocation6 + $0x14] sm:$0xf0] }
  0x1d   :  { %v487_v35 = vor.u32 %v597_v32, %v484_v33  ;;  %v595_v38 = vld [vmem:[#allocation6 + $0x14] sm:$0xf]  ;;  %v476_v39 = vld [vmem:[#allocation6 + $0x18] sm:$0xf0]  ;;  %v475_v40 = vor.u32 %v596_v37, %v474_v36  ;;  %v466_v42 = vld [vmem:[#allocation6] sm:$0xf] }
  0x1e   :  { %v479_v41 = vor.u32 %v595_v38, %v476_v39  ;;  %v594_v43 = vld [vmem:[#allocation6 + $0x4] sm:$0xf0]  ;;  %v593_v44 = vld [vmem:[#allocation6 + $0x4] sm:$0xf]  ;;  %v468_v45 = vld [vmem:[#allocation6 + $0x8] sm:$0xf0] }
  0x1f   :  { %200 = vmatpush.bf16.msra.mxu0 %v507_v16  ;;  %v467_v46 = vor.u32 %v594_v43, %v466_v42  ;;  %v471_v47 = vor.u32 %v593_v44, %v468_v45  ;;  %v592_v48 = vld [vmem:[#allocation3] sm:$0xff]  ;;  %v614_v53 = vld [vmem:[#allocation9 + $0x28] sm:$0xff]  ;;  %v613_v55 = vld [vmem:[#allocation9 + $0x20] sm:$0xff]  ;;  %s779_s15 = smov [#allocation11]   ;;  %s445_s19 = sshll.u32 %s839_s5, 4  ;;  %s446_s19 = int_to_ptr.hbm [resolvable:$true] %s445_s19 }
  0x20   :  { %214 = vmatpush.bf16.msra.mxu1 %v511_v17  ;;  %v616_v49 = vld [vmem:[#allocation9 + $0x38] sm:$0xff]  ;;  %v615_v51 = vld [vmem:[#allocation9 + $0x30] sm:$0xff]  ;;  %v622_v54 = vld [vmem:[#allocation9 + $0x68] sm:$0xff]  ;;  %s443_s16 = sshll.u32 %s779_s15, 4  ;;  %s444_s16 = int_to_ptr.vmem [resolvable:$true] %s443_s16 }
  0x21   :  { %v624_v50 = vld [vmem:[#allocation9 + $0x78] sm:$0xff]  ;;  %394 = vmatpush.bf16.msra.mxu2 %v616_v49  ;;  %v623_v52 = vld [vmem:[#allocation9 + $0x70] sm:$0xff]  ;;  %v621_v56 = vld [vmem:[#allocation9 + $0x60] sm:$0xff] }
  0x22   :  { %408 = vmatpush.bf16.msra.mxu3 %v624_v50  ;;  %v612_v57 = vld [vmem:[#allocation9 + $0x18] sm:$0xff]  ;;  %v611_v59 = vld [vmem:[#allocation9 + $0x10] sm:$0xff]  ;;  %v610_v62 = vld [vmem:[#allocation9 + $0x8] sm:$0xff] }
  0x23   :  { %201 = vmatpush.bf16.msra.mxu0 %v499_v22  ;;  %v620_v58 = vld [vmem:[#allocation9 + $0x58] sm:$0xff]  ;;  %v619_v60 = vld [vmem:[#allocation9 + $0x50] sm:$0xff]  ;;  %v618_v63 = vld [vmem:[#allocation9 + $0x48] sm:$0xff] }
  0x24   :  { %215 = vmatpush.bf16.msra.mxu1 %v503_v23  ;;  %v106_v61 = vld [vmem:[#allocation8] sm:$0x3]  ;;  %v609_v2 = vld [vmem:[#allocation9] sm:$0xff] }
  0x25   :  { %395 = vmatpush.bf16.msra.mxu2 %v615_v51  ;;  %v108_v0 = vperm.slane %v106_v61, 0  ;;  %v109_v1 = vperm.slane %v106_v61, 1  ;;  %v617_v3 = vld [vmem:[#allocation9 + $0x40] sm:$0xff]  ;;  %v634_v51 = vld [vmem:[%s838_s4] ss:$0 sm:$0xff] }
  0x26   :  { %409 = vmatpush.bf16.msra.mxu3 %v623_v52 }
  0x27   :  { %202 = vmatpush.bf16.msra.mxu0 %v491_v28 }
  0x28   :  { %216 = vmatpush.bf16.msra.mxu1 %v495_v29 }
  0x29   :  { %396 = vmatpush.bf16.msra.mxu2 %v614_v53 }
  0x2a   :  { %410 = vmatpush.bf16.msra.mxu3 %v622_v54 }
  0x2b   :  { %203 = vmatpush.bf16.msra.mxu0 %v483_v34 }
  0x2c   :  { %217 = vmatpush.bf16.msra.mxu1 %v487_v35 }
  0x2d   :  { %397 = vmatpush.bf16.msra.mxu2 %v613_v55 }
  0x2e   :  { %411 = vmatpush.bf16.msra.mxu3 %v621_v56 }
  0x2f   :  { %204 = vmatpush.bf16.msra.mxu0 %v475_v40 }
  0x30   :  { %218 = vmatpush.bf16.msra.mxu1 %v479_v41 }
  0x31   :  { %398 = vmatpush.bf16.msra.mxu2 %v612_v57 }
  0x32   :  { %412 = vmatpush.bf16.msra.mxu3 %v620_v58 }
  0x33   :  { %205 = vmatpush.bf16.msra.mxu0 %v467_v46 }
  0x34   :  { %219 = vmatpush.bf16.msra.mxu1 %v471_v47 }
  0x35   :  { %399 = vmatpush.bf16.msra.mxu2 %v611_v59 }
  0x36   :  { %206 = vmatmul.bf16.vlgmr.msra.gmra.mxu0 %v592_v48  ;;  %413 = vmatpush.bf16.msra.mxu3 %v619_v60 }
  0x37   :  { %220 = vmatmul.bf16.vlgmr.msra.gmra.mxu1 %v592_v48 }
  0x39   :  { %400 = vmatpush.bf16.msra.mxu2 %v610_v62 }
  0x3a   :  { %414 = vmatpush.bf16.msra.mxu3 %v618_v63 }
  0x3d   :  { %401 = vmatpush.bf16.msra.mxu2 %v609_v2 }
  0x3e   :  { %415 = vmatpush.bf16.msra.mxu3 %v617_v3 }
  0xb3   :  { %v207_v4 = vpop.f32.mrf.mxu0 }
  0xb4   :  { %v208_v5 = vadd.f32 %v207_v4, %v108_v0  ;;  %v221_v6 = vpop.f32.mrf.mxu1 }
  0xb5   :  { %v222_v7 = vadd.f32 %v221_v6, %v109_v1 }
  0xb6   :  { %v226_v8 = vmul.f32 %v208_v5, %v208_v5 }
  0xb7   :  { %v227_v9 = vmul.f32 %v222_v7, %v222_v7 }
  0xb8   :  { %v230_v10 = vmul.f32 %v226_v8, %v208_v5 }
  0xb9   :  { %v231_v11 = vmul.f32 %v227_v9, %v222_v7 }
  0xba   :  { %v234_v12 = vmul.f32 0.044715, %v230_v10 }
  0xbb   :  { %v235_v13 = vmul.f32 0.044715, %v231_v11  ;;  %v209_v14 = vpop.f32.mrf.mxu0 }
  0xbc   :  { %v238_v15 = vadd.f32 %v234_v12, %v208_v5  ;;  %v210_v16 = vadd.f32 %v209_v14, %v108_v0  ;;  %v223_v17 = vpop.f32.mrf.mxu1 }
  0xbd   :  { %v239_v18 = vadd.f32 %v235_v13, %v222_v7  ;;  %v224_v19 = vadd.f32 %v223_v17, %v109_v1 }
  0xbe   :  { %v228_v20 = vmul.f32 %v210_v16, %v210_v16  ;;  %v242_v21 = vmul.f32 0.7978846, %v238_v15 }
  0xbf   :  { %v229_v22 = vmul.f32 %v224_v19, %v224_v19  ;;  %v243_v23 = vmul.f32 0.7978846, %v239_v18 }
  0xc0   :  { %v232_v24 = vmul.f32 %v228_v20, %v210_v16  ;;  %635 = vtanh.f32 %v242_v21 }
  0xc1   :  { %v233_v25 = vmul.f32 %v229_v22, %v224_v19  ;;  %637 = vtanh.f32 %v243_v23 }
  0xc2   :  { %v236_v26 = vmul.f32 0.044715, %v232_v24 }
  0xc3   :  { %v237_v27 = vmul.f32 0.044715, %v233_v25 }
  0xc4   :  { %v240_v28 = vadd.f32 %v236_v26, %v210_v16 }
  0xc5   :  { %v241_v29 = vadd.f32 %v237_v27, %v224_v19 }
  0xc6   :  { %v244_v30 = vmul.f32 0.7978846, %v240_v28  ;;  %v636_v32 = vpop.eup %635 }
  0xc7   :  { %v245_v31 = vmul.f32 0.7978846, %v241_v29  ;;  %v638_v33 = vpop.eup %637  ;;  %v250_v34 = vadd.f32 1.0, %v636_v32 }
  0xc8   :  { %639 = vtanh.f32 %v244_v30  ;;  %v251_v35 = vadd.f32 1.0, %v638_v33 }
  0xc9   :  { %641 = vtanh.f32 %v245_v31  ;;  %v254_v39 = vmul.f32 0.5, %v250_v34 }
  0xca   :  { %v255_v41 = vmul.f32 0.5, %v251_v35 }
  0xcb   :  { %v258_v44 = vmul.f32 %v254_v39, %v208_v5 }
  0xcc   :  { %v259_v46 = vmul.f32 %v255_v41, %v222_v7 }
  0xce   :  { %v640_v36 = vpop.eup %639 }
  0xcf   :  { %v642_v37 = vpop.eup %641  ;;  %v252_v38 = vadd.f32 1.0, %v640_v36 }
  0xd0   :  { %v253_v40 = vadd.f32 1.0, %v642_v37 }
  0xd1   :  { %v256_v42 = vmul.f32 0.5, %v252_v38 }
  0xd2   :  { %v257_v43 = vmul.f32 0.5, %v253_v40 }
  0xd3   :  { %v260_v45 = vmul.f32 %v256_v42, %v210_v16 }
  0xd4   :  { %v261_v47 = vmul.f32 %v257_v43, %v224_v19 }
  0xd5   :  { %v264_v48 = vpack.c.bf16 %v260_v45, %v258_v44 }
  0xd6   :  { %v265_v49 = vpack.c.bf16 %v261_v47, %v259_v46 }
  0xd7   :  { %402 = vmatmul.bf16.vlgmr.msra.gmra.mxu2 %v264_v48 }
  0xd8   :  { %416 = vmatmul.bf16.vlgmr.msra.gmra.mxu3 %v265_v49 }
 0x15a   :  { %v403_v50 = vpop.f32.mrf.mxu2 }
 0x15b   :  { %v417_v52 = vpop.f32.mrf.mxu3 }
 0x15c   :  { %v418_v53 = vadd.f32 %v417_v52, %v403_v50 }
 0x15e   :  { %v435_v54 = vadd.f32 %v634_v51, %v418_v53 }
 0x160   :  { %437 = vst [vmem:[#allocation11] sm:$0xff] %v435_v54 }
 0x162   :  { %v405_v55 = vpop.f32.mrf.mxu2 }
 0x163   :  { %v419_v56 = vpop.f32.mrf.mxu3 }
 0x164   :  { %v420_v57 = vadd.f32 %v419_v56, %v405_v55 }
 0x166   :  { %v436_v58 = vadd.f32 %v634_v51, %v420_v57 }
 0x168   :  { %438 = vst [vmem:[#allocation11 + $0x8] sm:$0xff] %v436_v58 }
 0x169   :  { %451 = dma.vmem_to_hbm [thread:$0]  %s444_s16, 256, %s446_s19, [#allocation5], %s772_s26, %s772_s26, %s773_s27  }
 0x16a   :  { %769 = dma.done.wait [#allocation5], 256  }
 0x16b   :  { %770 = vsyncadd [#allocation5], 4294967040 }
 0x16c   :  { %456 = vsyncpa [#allocation4], 1 }
 0x16d   :  { %457 = vsyncpa [#allocation7], 1 }
 0x16e   :  { %458 = vsyncpa [#allocation10], 1 }
 0x16f   :  { %459 = vsyncpa [#allocation5], 1 }

</bundles_post_ra>
